<compile_context>
chip_gen: v5e
topology: v5e:2x2
jax: 0.10.0
libtpu: 0.0.40
codegen_flags: <defaults>
</compile_context>

<pallas_src>
import jax
import jax.numpy as jnp
from jax.experimental import pallas as pl
from jax.experimental.pallas import tpu as pltpu

INPUT_DIM = 32
BEST_HIDDEN = 64
H2 = 32
OUT_DIM = 1


def _round_up(n, m):
    return ((n + m - 1) // m) * m


def mlp_kernel(x_ref, w1_ref, b1_ref, w2_ref, b2_ref, w3_ref, b3_ref, o_ref):
    # fc1 + ReLU (MXU matmul, f32 accumulate; bias/ReLU in f32 on the VPU)
    h1 = jnp.dot(x_ref[...], w1_ref[...], preferred_element_type=jnp.float32)
    h1 = jnp.maximum(h1 + b1_ref[...], 0.0)
    # fc2 + ReLU
    h2 = jnp.dot(h1.astype(w2_ref.dtype), w2_ref[...],
                 preferred_element_type=jnp.float32)
    h2 = jnp.maximum(h2 + b2_ref[...], 0.0)
    # fc3 (no activation); b3 is a scalar read from SMEM
    o = jnp.dot(h2.astype(w3_ref.dtype), w3_ref[...],
                preferred_element_type=jnp.float32)
    o_ref[...] = (o + b3_ref[0, 0]).astype(o_ref.dtype)


def _x_map(i):
    return (i, 0)


def _const_map(i):
    return (0, 0)


def neural_forward(x, params, *, tile_rows=512, compute_dtype=jnp.float32):
    """Fused 3-layer MLP (fc1-ReLU, fc2-ReLU, fc3) as a single Pallas kernel.

    x: (B, INPUT_DIM) float32
    params: dict with w1 (D,H1), b1 (1,H1), w2 (H1,H2), b2 (1,H2),
            w3 (H2,1), b3 (1,1)  -- all float32
    returns: (B, 1) float32
    """
    B = x.shape[0]

    # Row-tile size: multiple of 8 (sublane), capped at tile_rows.
    tb = min(_round_up(int(tile_rows), 8), _round_up(B, 8))
    b_pad = _round_up(B, tb)
    num_tiles = b_pad // tb

    x_c = x.astype(compute_dtype)
    if b_pad != B:
        x_c = jnp.pad(x_c, ((0, b_pad - B), (0, 0)))

    # Matmul operands may be bf16; biases / accumulation stay f32.
    w1 = params["w1"].astype(compute_dtype)
    w2 = params["w2"].astype(compute_dtype)
    w3 = params["w3"].astype(compute_dtype)
    b1 = params["b1"].astype(jnp.float32)
    b2 = params["b2"].astype(jnp.float32)
    b3 = params["b3"].astype(jnp.float32).reshape(1, 1)

    in_specs = [
        pl.BlockSpec((tb, INPUT_DIM), _x_map),                     # x: tiled over batch
        pl.BlockSpec((INPUT_DIM, BEST_HIDDEN), _const_map),        # w1: resident
        pl.BlockSpec((1, BEST_HIDDEN), _const_map),                # b1: resident
        pl.BlockSpec((BEST_HIDDEN, H2), _const_map),               # w2: resident
        pl.BlockSpec((1, H2), _const_map),                         # b2: resident
        pl.BlockSpec((H2, OUT_DIM), _const_map),                   # w3: resident
        pl.BlockSpec((1, 1), _const_map,
                     memory_space=pltpu.MemorySpace.SMEM),         # b3: scalar in SMEM
    ]
    out_specs = pl.BlockSpec((tb, OUT_DIM), _x_map)

    itemsize = jnp.dtype(compute_dtype).itemsize
    flops = 2 * b_pad * (INPUT_DIM * BEST_HIDDEN + BEST_HIDDEN * H2 + H2 * OUT_DIM)
    bytes_accessed = (
        x_c.size * itemsize
        + (w1.size + w2.size + w3.size) * itemsize
        + (b1.size + b2.size + b3.size) * 4
        + b_pad * OUT_DIM * 4
    )

    out = pl.pallas_call(
        mlp_kernel,
        out_shape=jax.ShapeDtypeStruct((b_pad, OUT_DIM), jnp.float32),
        grid=(num_tiles,),
        in_specs=in_specs,
        out_specs=out_specs,
        compiler_params=pltpu.CompilerParams(
            dimension_semantics=("parallel",)),
        cost_estimate=pl.CostEstimate(
            flops=int(flops), transcendentals=0,
            bytes_accessed=int(bytes_accessed)),
    )(x_c, w1, b1, w2, b2, w3, b3)

    return out[:B]


def init_params(key):
    """Deterministic parameter init (shapes match the PyTorch module)."""
    k1, k2, k3, k4, k5, k6 = jax.random.split(key, 6)
    # PyTorch Linear weight is (out, in); we store the transpose (in, out).
    w1 = jax.random.normal(k1, (INPUT_DIM, BEST_HIDDEN), jnp.float32) * 0.1
    b1 = jax.random.normal(k2, (1, BEST_HIDDEN), jnp.float32) * 0.1
    w2 = jax.random.normal(k3, (BEST_HIDDEN, H2), jnp.float32) * 0.1
    b2 = jax.random.normal(k4, (1, H2), jnp.float32) * 0.1
    w3 = jax.random.normal(k5, (H2, OUT_DIM), jnp.float32) * 0.1
    b3 = jax.random.normal(k6, (1, OUT_DIM), jnp.float32) * 0.1
    return dict(w1=w1, b1=b1, w2=w2, b2=b2, w3=w3, b3=b3)


def reference_forward(x, p):
    h1 = jnp.maximum(x @ p["w1"] + p["b1"], 0.0)
    h2 = jnp.maximum(h1 @ p["w2"] + p["b2"], 0.0)
    return h2 @ p["w3"] + p["b3"]


if __name__ == "__main__":
    key = jax.random.PRNGKey(0)
    kx, kp, kx2 = jax.random.split(key, 3)
    params = init_params(kp)

    # 1) small single-tile case (B fits one 8-row tile)
    B = 8
    x = jax.random.normal(kx, (B, INPUT_DIM), jnp.float32)
    out = jax.block_until_ready(neural_forward(x, params))
    ref = reference_forward(x, params)
    assert out.shape == (B, OUT_DIM), out.shape
    assert jnp.allclose(out, ref, atol=1e-4, rtol=1e-4), "f32 single-tile mismatch"

    # 2) multi-tile case with tail padding (B not a multiple of the tile)
    B2 = 300
    x2 = jax.random.normal(kx2, (B2, INPUT_DIM), jnp.float32)
    out2 = jax.block_until_ready(neural_forward(x2, params, tile_rows=128))
    ref2 = reference_forward(x2, params)
    assert out2.shape == (B2, OUT_DIM), out2.shape
    assert jnp.allclose(out2, ref2, atol=1e-4, rtol=1e-4), "f32 multi-tile mismatch"

    # 3) bf16 compute path (x / weights bf16, f32 accumulate) -- loose tolerance
    out_bf16 = jax.block_until_ready(
        neural_forward(x2, params, tile_rows=128, compute_dtype=jnp.bfloat16))
    assert out_bf16.shape == (B2, OUT_DIM), out_bf16.shape
    assert jnp.allclose(out_bf16, ref2, atol=1e-1, rtol=1e-1), "bf16 mismatch"

    print("KERNEL_OK")
</pallas_src>

<mosaic_0001>
module attributes {stable_mosaic.version = 11 : i64} {
  func.func @mlp_kernel(%arg0: i32, %arg1: memref<8x32xf32, #tpu.memory_space<vmem>>, %arg2: memref<32x64xf32, #tpu.memory_space<vmem>>, %arg3: memref<1x64xf32, #tpu.memory_space<vmem>>, %arg4: memref<64x32xf32, #tpu.memory_space<vmem>>, %arg5: memref<1x32xf32, #tpu.memory_space<vmem>>, %arg6: memref<32x1xf32, #tpu.memory_space<vmem>>, %arg7: memref<1x1xf32, #tpu.memory_space<smem>>, %arg8: memref<8x1xf32, #tpu.memory_space<vmem>>) attributes {dimension_semantics = [#tpu.dimension_semantics<parallel>], iteration_bounds = array<i64: 1>, scalar_prefetch = 0 : i64, scratch_operands = 0 : i64, tpu.core_type = #tpu.core_type<tc>, window_params = [{transform_indices = @transform_0, window_bounds = array<i64: 8, 32>}, {pipeline_mode = #tpu.pipeline_mode<synchronous>, transform_indices = @transform_1, window_bounds = array<i64: 32, 64>}, {pipeline_mode = #tpu.pipeline_mode<synchronous>, transform_indices = @transform_2, window_bounds = array<i64: 1, 64>}, {pipeline_mode = #tpu.pipeline_mode<synchronous>, transform_indices = @transform_3, window_bounds = array<i64: 64, 32>}, {pipeline_mode = #tpu.pipeline_mode<synchronous>, transform_indices = @transform_4, window_bounds = array<i64: 1, 32>}, {pipeline_mode = #tpu.pipeline_mode<synchronous>, transform_indices = @transform_5, window_bounds = array<i64: 32, 1>}, {transform_indices = @transform_6, window_bounds = array<i64: 1, 1>}, {transform_indices = @transform_7, window_bounds = array<i64: 8, 1>}]} {
    %c0 = arith.constant 0 : index
    %c0_0 = arith.constant 0 : index
    %0 = vector.load %arg1[%c0, %c0_0] : memref<8x32xf32, #tpu.memory_space<vmem>>, vector<8x32xf32>
    %c0_1 = arith.constant 0 : index
    %c0_2 = arith.constant 0 : index
    %1 = vector.load %arg2[%c0_1, %c0_2] : memref<32x64xf32, #tpu.memory_space<vmem>>, vector<32x64xf32>
    %cst = arith.constant dense<0.000000e+00> : vector<8x64xf32>
    %2 = tpu.matmul %0, %1, %cst {dimension_numbers = #tpu.dot_dimension_numbers<[1], [0], [0], [1], [0, 0, 1, 1], [], []>} : vector<8x32xf32>, vector<32x64xf32>, vector<8x64xf32> -> vector<8x64xf32>
    %c0_3 = arith.constant 0 : index
    %c0_4 = arith.constant 0 : index
    %3 = vector.load %arg3[%c0_3, %c0_4] : memref<1x64xf32, #tpu.memory_space<vmem>>, vector<1x64xf32>
    %4 = vector.broadcast %3 : vector<1x64xf32> to vector<8x64xf32>
    %5 = arith.addf %2, %4 : vector<8x64xf32>
    %cst_5 = arith.constant 0.000000e+00 : f32
    %6 = vector.broadcast %cst_5 : f32 to vector<8x64xf32>
    %7 = arith.maximumf %5, %6 : vector<8x64xf32>
    %c0_6 = arith.constant 0 : index
    %c0_7 = arith.constant 0 : index
    %8 = vector.load %arg4[%c0_6, %c0_7] : memref<64x32xf32, #tpu.memory_space<vmem>>, vector<64x32xf32>
    %cst_8 = arith.constant dense<0.000000e+00> : vector<8x32xf32>
    %9 = tpu.matmul %7, %8, %cst_8 {dimension_numbers = #tpu.dot_dimension_numbers<[1], [0], [0], [1], [0, 0, 1, 1], [], []>} : vector<8x64xf32>, vector<64x32xf32>, vector<8x32xf32> -> vector<8x32xf32>
    %c0_9 = arith.constant 0 : index
    %c0_10 = arith.constant 0 : index
    %10 = vector.load %arg5[%c0_9, %c0_10] : memref<1x32xf32, #tpu.memory_space<vmem>>, vector<1x32xf32>
    %11 = vector.broadcast %10 : vector<1x32xf32> to vector<8x32xf32>
    %12 = arith.addf %9, %11 : vector<8x32xf32>
    %cst_11 = arith.constant 0.000000e+00 : f32
    %13 = vector.broadcast %cst_11 : f32 to vector<8x32xf32>
    %14 = arith.maximumf %12, %13 : vector<8x32xf32>
    %c0_12 = arith.constant 0 : index
    %c0_13 = arith.constant 0 : index
    %15 = vector.load %arg6[%c0_12, %c0_13] : memref<32x1xf32, #tpu.memory_space<vmem>>, vector<32x1xf32>
    %cst_14 = arith.constant dense<0.000000e+00> : vector<8x1xf32>
    %16 = tpu.matmul %14, %15, %cst_14 {dimension_numbers = #tpu.dot_dimension_numbers<[1], [0], [0], [1], [0, 0, 1, 1], [], []>} : vector<8x32xf32>, vector<32x1xf32>, vector<8x1xf32> -> vector<8x1xf32>
    %c0_15 = arith.constant 0 : index
    %c0_16 = arith.constant 0 : index
    %17 = memref.load %arg7[%c0_15, %c0_16] : memref<1x1xf32, #tpu.memory_space<smem>>
    %18 = vector.broadcast %17 : f32 to vector<8x1xf32>
    %19 = arith.addf %16, %18 : vector<8x1xf32>
    %c0_17 = arith.constant 0 : index
    %c0_18 = arith.constant 0 : index
    %20 = vector.load %arg8[%c0_17, %c0_18] : memref<8x1xf32, #tpu.memory_space<vmem>>, vector<8x1xf32>
    tpu.vector_store %arg8[%c0_17, %c0_18], %19 {strides = array<i32>} : memref<8x1xf32, #tpu.memory_space<vmem>>, vector<8x1xf32>,
    return
  }
  func.func @transform_0(%arg0: i32) -> (i32, i32) {
    %c0_i32 = arith.constant 0 : i32
    %c0_i32_0 = arith.constant 0 : i32
    return %arg0, %c0_i32 : i32, i32
  }
  func.func @transform_1(%arg0: i32) -> (i32, i32) {
    %c0_i32 = arith.constant 0 : i32
    %c0_i32_0 = arith.constant 0 : i32
    %c0_i32_1 = arith.constant 0 : i32
    return %c0_i32, %c0_i32_0 : i32, i32
  }
  func.func @transform_2(%arg0: i32) -> (i32, i32) {
    %c0_i32 = arith.constant 0 : i32
    %c0_i32_0 = arith.constant 0 : i32
    %c0_i32_1 = arith.constant 0 : i32
    return %c0_i32, %c0_i32_0 : i32, i32
  }
  func.func @transform_3(%arg0: i32) -> (i32, i32) {
    %c0_i32 = arith.constant 0 : i32
    %c0_i32_0 = arith.constant 0 : i32
    %c0_i32_1 = arith.constant 0 : i32
    return %c0_i32, %c0_i32_0 : i32, i32
  }
  func.func @transform_4(%arg0: i32) -> (i32, i32) {
    %c0_i32 = arith.constant 0 : i32
    %c0_i32_0 = arith.constant 0 : i32
    %c0_i32_1 = arith.constant 0 : i32
    return %c0_i32, %c0_i32_0 : i32, i32
  }
  func.func @transform_5(%arg0: i32) -> (i32, i32) {
    %c0_i32 = arith.constant 0 : i32
    %c0_i32_0 = arith.constant 0 : i32
    %c0_i32_1 = arith.constant 0 : i32
    return %c0_i32, %c0_i32_0 : i32, i32
  }
  func.func @transform_6(%arg0: i32) -> (i32, i32) {
    %c0_i32 = arith.constant 0 : i32
    %c0_i32_0 = arith.constant 0 : i32
    %c0_i32_1 = arith.constant 0 : i32
    return %c0_i32, %c0_i32_0 : i32, i32
  }
  func.func @transform_7(%arg0: i32) -> (i32, i32) {
    %c0_i32 = arith.constant 0 : i32
    %c0_i32_0 = arith.constant 0 : i32
    return %arg0, %c0_i32 : i32, i32
  }
}

</mosaic_0001>

<bundles_post_ra>
// kernel: tpu_custom_call.1
= control target key start
LH: loop header
LB: loop body
LE: loop exit
PB: predicated region body
PF: predicated region fallthrough
CT: control target
= control target key end

     0   :  { %vm36_vm0 = vcmask 261120   ;;  %vm73_vm1 = vcmask 523264   ;;  %vm127_vm2 = vcmask 7168   ;;  %s243_s1 = inlined_call_operand.vmem [shape: f32[32,64], index: 1, kind: input, shape index: {}]   ;;  %s244_s3 = inlined_call_operand.vmem [shape: f32[64,32], index: 3, kind: input, shape index: {}]   ;;  %s245_s0 = inlined_call_operand.vmem [shape: f32[8,32], index: 0, kind: input, shape index: {}]   ;;  %s246_s2 = inlined_call_operand.vmem [shape: f32[1,64], index: 2, kind: input, shape index: {}]   ;;  %s247_s4 = inlined_call_operand.vmem [shape: f32[1,32], index: 4, kind: input, shape index: {}]   ;;  %s248_s5 = inlined_call_operand.vmem [shape: f32[32,1], index: 5, kind: input, shape index: {}]   ;;  %s249_s6 = inlined_call_operand.<no memory space> [shape: f32[1,1], index: 6, kind: input, shape index: {}]   ;;  %s250_s7 = inlined_call_operand.vmem [shape: f32[8,1], index: 7, kind: output, shape index: {}]  }
   0x1   :  { %v31_v0 = vld [vmem:[%s243_s1 + $0x18] sm:$0xff]  ;;  %v30_v1 = vld [vmem:[%s243_s1 + $0x10] sm:$0xff]  ;;  %v29_v3 = vld [vmem:[%s243_s1 + $0x8] sm:$0xff]  ;;  %v103_v25 = vstv %s249_s6 }
   0x2   :  { %52 = vmatpush.msra.mxu0 %v31_v0  ;;  %v68_v2 = vld [vmem:[%s244_s3 + $0x38] sm:$0xff]  ;;  %v67_v4 = vld [vmem:[%s244_s3 + $0x30] sm:$0xff]  ;;  %v66_v5 = vld [vmem:[%s244_s3 + $0x28] sm:$0xff] }
   0x3   :  { %85 = vmatpush.msra.mxu1 %v68_v2  ;;  %v28_v6 = vld [vmem:[%s243_s1] sm:$0xff]  ;;  %v64_v9 = vld [vmem:[%s244_s3 + $0x18] sm:$0xff]  ;;  %v63_v10 = vld [vmem:[%s244_s3 + $0x10] sm:$0xff] }
   0x4   :  { %53 = vmatpush.msra.mxu0 %v30_v1  ;;  %v27_v7 = vld [vmem:[%s245_s0] sm:$0xff]  ;;  %v62_v11 = vld [vmem:[%s244_s3 + $0x8] sm:$0xff]  ;;  %v101_v13 = vld [vmem:[%s248_s5 + $0x18] sm:$0xff] }
   0x5   :  { %86 = vmatpush.msra.mxu1 %v67_v4  ;;  %v65_v8 = vld [vmem:[%s244_s3 + $0x20] sm:$0xff]  ;;  %119 = vmatpush.msra.mxu2 %v101_v13  ;;  %v100_v18 = vld [vmem:[%s248_s5 + $0x10] sm:$0xff]  ;;  %v99_v19 = vld [vmem:[%s248_s5 + $0x8] sm:$0xff] }
   0x6   :  { %54 = vmatpush.msra.mxu0 %v29_v3  ;;  %v61_v12 = vld [vmem:[%s244_s3] sm:$0xff] }
   0x7   :  { %87 = vmatpush.msra.mxu1 %v66_v5  ;;  %v136_v14 = vld [vmem:[%s246_s2] ss:$0 sm:$0xff]  ;;  %120 = vmatpush.msra.mxu2 %v100_v18 }
   0x8   :  { %55 = vmatpush.msra.mxu0 %v28_v6  ;;  %v98_v20 = vld [vmem:[%s248_s5] sm:$0xff] }
   0x9   :  { %133 = vmatmul.msk.f32.vlgmr.msra.gmra.mxu0 %vm36_vm0, %v27_v7  ;;  %88 = vmatpush.msra.mxu1 %v65_v8  ;;  %v137_v21 = vld [vmem:[%s247_s4] ss:$0 sm:$0xff] }
   0xa   :  { %121 = vmatpush.msra.mxu2 %v99_v19 }
   0xb   :  { %89 = vmatpush.msra.mxu1 %v64_v9 }
   0xc   :  { %122 = vmatpush.msra.mxu2 %v98_v20 }
   0xd   :  { %90 = vmatpush.msra.mxu1 %v63_v10 }
   0xf   :  { %91 = vmatpush.msra.mxu1 %v62_v11 }
  0x11   :  { %92 = vmatpush.msra.mxu1 %v61_v12 }
  0x86   :  { %v57_v15 = vpop.f32.mrf.mxu0 }
  0x87   :  { %v58_v16 = vadd.f32 %v136_v14, %v57_v15 }
  0x89   :  { %v60_v17 = vmax.f32 %v58_v16, 0.0 }
  0x8b   :  { %134 = vmatmul.msk.f32.vlgmr.msra.gmra.mxu1 %vm73_vm1, %v60_v17 }
 0x108   :  { %v94_v22 = vpop.f32.mrf.mxu1 }
 0x109   :  { %v95_v23 = vadd.f32 %v137_v21, %v94_v22 }
 0x10b   :  { %v97_v24 = vmax.f32 %v95_v23, 0.0 }
 0x10d   :  { %135 = vmatmul.msk.f32.vlgmr.msra.gmra.mxu2 %vm36_vm0, %v97_v24 }
 0x190   :  { %v124_v26 = vpop.f32.mrf.mxu2 }
 0x191   :  { %v125_v27 = vadd.f32 %v124_v26, %v103_v25 }
 0x193   :  { %128 = vst.msk [vmem:[%s250_s7] sm:$0xff] %vm127_vm2, %v125_v27 }

</bundles_post_ra>
